<compile_context>
chip_gen: v7x
topology: tpu7x:2x2x1
jax: 0.10.0
libtpu: 0.0.40
codegen_flags: <defaults>
</compile_context>

<pallas_src>
import functools

import jax
import jax.numpy as jnp
from jax.experimental import pallas as pl
from jax.experimental.pallas import tpu as pltpu


_LANE = 128          # TPU lane width; vocab (last) dim padded to a multiple of this.
_MAX_TILE_N = 2048   # rows per grid step (sweep 1024-4096; 2048 ~ 1 MiB f32 tile).
_NEG_BIAS = -1.0e30  # finite "-inf" for padded vocab lanes (never -inf on the MXU).
_VMEM_LIMIT = 32 * 1024 * 1024


def _round_up(x, m):
    return (x + m - 1) // m * m


# --------------------------------------------------------------------------
# Kernels
# --------------------------------------------------------------------------
def _bigram_loss_kernel(idx_ref, tgt_ref, table_ref, *out_refs,
                        n_valid, with_logits):
    """One grid step: TILE_N rows of logits (optional) + per-row CE loss."""
    i = pl.program_id(0)

    idx = idx_ref[...]                        # (TILE_N, 1) int32
    tgt = tgt_ref[...]                        # (TILE_N, 1) int32
    table = table_ref[...]                    # (V_pad, V_pad) table dtype
    tile_n = idx.shape[0]
    v_pad = table.shape[1]

    col = jax.lax.broadcasted_iota(jnp.int32, (tile_n, v_pad), 1)

    # Embedding gather as one-hot @ table on the MXU (exact; f32 accumulate).
    onehot = (col == idx).astype(table.dtype)
    logits = jnp.dot(onehot, table, preferred_element_type=jnp.float32)

    if with_logits:
        logits_ref, per_row_ref = out_refs
        logits_ref[...] = logits              # lane-dense (TILE_N, V_pad) store
    else:
        (per_row_ref,) = out_refs

    # Cross entropy.  Padded vocab lanes carry the pre-biased -1e30 from the
    # padded table columns -> exp underflows to 0; no in-kernel mask needed.
    m = jnp.max(logits, axis=-1, keepdims=True)
    lse = m + jnp.log(jnp.sum(jnp.exp(logits - m), axis=-1, keepdims=True))
    picked = jnp.sum(jnp.where(col == tgt, logits, 0.0), axis=-1, keepdims=True)

    per_row = lse - picked                    # (TILE_N, 1)
    row = i * tile_n + jax.lax.broadcasted_iota(jnp.int32, (tile_n, 1), 0)
    per_row_ref[...] = jnp.where(row < n_valid, per_row, 0.0)  # zero padded rows


def _bigram_logits_kernel(idx_ref, table_ref, logits_ref):
    """targets=None path: embedding lookup only (fully parallel over row tiles)."""
    idx = idx_ref[...]
    table = table_ref[...]
    tile_n = idx.shape[0]
    v_pad = table.shape[1]
    col = jax.lax.broadcasted_iota(jnp.int32, (tile_n, v_pad), 1)
    onehot = (col == idx).astype(table.dtype)
    logits_ref[...] = jnp.dot(onehot, table, preferred_element_type=jnp.float32)


# --------------------------------------------------------------------------
# Wrappers
# --------------------------------------------------------------------------
def _pad_table(table):
    v = table.shape[0]
    v_pad = _round_up(v, _LANE)
    if v_pad != v:
        # Padded columns get a large finite negative so they never survive the
        # logsumexp; padded rows are never selected (idx < v).
        table = jnp.pad(table, ((0, v_pad - v), (0, v_pad - v)),
                        constant_values=_NEG_BIAS)
    return table, v, v_pad


def _pad_rows(flat, n, n_pad):
    if n_pad != n:
        flat = jnp.pad(flat, (0, n_pad - n))
    return flat.reshape(n_pad, 1)


def _tiling(n):
    tile_n = _MAX_TILE_N if n >= _MAX_TILE_N else _round_up(n, _LANE)
    n_pad = _round_up(n, tile_n)
    return tile_n, n_pad


def _compiler_params():
    # No cross-step dependency remains (per-row loss blocks are indexed by the
    # grid step), so the single grid axis can shard across v7x's 2 TensorCores.
    return pltpu.CompilerParams(
        dimension_semantics=("parallel",),
        vmem_limit_bytes=_VMEM_LIMIT,
    )


@functools.partial(jax.jit, static_argnames=("return_logits", "pad_logits"))
def _forward_with_loss(idx, table, targets, return_logits=True, pad_logits=False):
    b, t = idx.shape
    n = b * t
    table_p, v, v_pad = _pad_table(table)
    tile_n, n_pad = _tiling(n)

    idx_flat = _pad_rows(idx.reshape(n).astype(jnp.int32), n, n_pad)
    tgt_flat = _pad_rows(targets.reshape(n).astype(jnp.int32), n, n_pad)

    kernel = functools.partial(_bigram_loss_kernel, n_valid=n,
                               with_logits=return_logits)

    per_row_spec = pl.BlockSpec((tile_n, 1), lambda i: (i, 0))
    per_row_shape = jax.ShapeDtypeStruct((n_pad, 1), jnp.float32)
    if return_logits:
        out_specs = (pl.BlockSpec((tile_n, v_pad), lambda i: (i, 0)), per_row_spec)
        out_shape = (jax.ShapeDtypeStruct((n_pad, v_pad), jnp.float32),
                     per_row_shape)
        bytes_out = n_pad * v_pad * 4 + n_pad * 4
    else:
        out_specs = (per_row_spec,)
        out_shape = (per_row_shape,)
        bytes_out = n_pad * 4

    bytes_accessed = (2 * n_pad * 4
                      + v_pad * v_pad * table_p.dtype.itemsize
                      + bytes_out)

    outs = pl.pallas_call(
        kernel,
        grid=(n_pad // tile_n,),
        in_specs=[
            pl.BlockSpec((tile_n, 1), lambda i: (i, 0)),
            pl.BlockSpec((tile_n, 1), lambda i: (i, 0)),
            pl.BlockSpec((v_pad, v_pad), lambda i: (0, 0)),   # table resident
        ],
        out_specs=out_specs,
        out_shape=out_shape,
        compiler_params=_compiler_params(),
        cost_estimate=pl.CostEstimate(
            flops=2 * n_pad * v_pad * v_pad,
            transcendentals=n_pad * v_pad,
            bytes_accessed=bytes_accessed,
        ),
    )(idx_flat, tgt_flat, table_p)

    if return_logits:
        logits_p, per_row = outs
    else:
        (per_row,) = outs

    # Padded rows contribute exactly 0; f32 tree-reduce outside the kernel.
    loss = jnp.sum(per_row) * jnp.float32(1.0 / n)

    if not return_logits:
        return None, loss
    if pad_logits:
        return logits_p, loss                 # padded buffer, no extra HBM copy
    logits = logits_p if n_pad == n else logits_p[:n]
    return logits[:, :v], loss                # matches PyTorch's (B*T, C) view


@functools.partial(jax.jit, static_argnames=("pad_logits",))
def _forward_logits(idx, table, pad_logits=False):
    b, t = idx.shape
    n = b * t
    table_p, v, v_pad = _pad_table(table)
    tile_n, n_pad = _tiling(n)
    idx_flat = _pad_rows(idx.reshape(n).astype(jnp.int32), n, n_pad)

    logits_p = pl.pallas_call(
        _bigram_logits_kernel,
        grid=(n_pad // tile_n,),
        in_specs=[
            pl.BlockSpec((tile_n, 1), lambda i: (i, 0)),
            pl.BlockSpec((v_pad, v_pad), lambda i: (0, 0)),
        ],
        out_specs=pl.BlockSpec((tile_n, v_pad), lambda i: (i, 0)),
        out_shape=jax.ShapeDtypeStruct((n_pad, v_pad), jnp.float32),
        compiler_params=_compiler_params(),
        cost_estimate=pl.CostEstimate(
            flops=2 * n_pad * v_pad * v_pad,
            transcendentals=0,
            bytes_accessed=(n_pad * 4 + v_pad * v_pad * table_p.dtype.itemsize
                            + n_pad * v_pad * 4),
        ),
    )(idx_flat, table_p)

    if pad_logits:
        return logits_p                       # (n_pad, V_pad), padded lanes = -1e30
    logits = logits_p if n_pad == n else logits_p[:n]
    return logits[:, :v].reshape(b, t, v)


def bigram_forward(idx, table, targets=None, *, return_logits=True,
                   pad_logits=False):
    """Matches BigramLanguageModel.forward -> (logits, loss).

    targets given : logits (B*T, V) f32 (or padded / None on the fast paths),
                    scalar mean cross-entropy loss.
    targets None  : logits (B, T, V) f32, loss None.
    """
    if targets is None:
        return _forward_logits(idx, table, pad_logits=pad_logits), None
    return _forward_with_loss(idx, table, targets,
                              return_logits=return_logits,
                              pad_logits=pad_logits)


# --------------------------------------------------------------------------
# Pure-JAX reference + demo
# --------------------------------------------------------------------------
def _reference_forward(idx, table, targets):
    logits = table.astype(jnp.float32)[idx]            # (B, T, V)
    b, t, c = logits.shape
    lf = logits.reshape(b * t, c)
    tf = targets.reshape(b * t)
    lse = jax.scipy.special.logsumexp(lf, axis=-1)
    picked = jnp.take_along_axis(lf, tf[:, None], axis=-1)[:, 0]
    return lf, jnp.mean(lse - picked)


if __name__ == "__main__":
    key = jax.random.PRNGKey(0)
    k_table, k_idx, k_tgt, k_idx2, k_tgt2 = jax.random.split(key, 5)

    vocab_size = 65   # tiny-shakespeare-style character vocab
    B, T = 2, 8

    # nn.Embedding default init is N(0, 1).
    table_f32 = jax.random.normal(k_table, (vocab_size, vocab_size), jnp.float32)
    idx = jax.random.randint(k_idx, (B, T), 0, vocab_size, dtype=jnp.int32)
    targets = jax.random.randint(k_tgt, (B, T), 0, vocab_size, dtype=jnp.int32)

    # f32 table (matches the PyTorch module exactly).
    logits, loss = bigram_forward(idx, table_f32, targets)
    jax.block_until_ready((logits, loss))
    ref_logits, ref_loss = _reference_forward(idx, table_f32, targets)
    assert logits.shape == (B * T, vocab_size)
    assert jnp.allclose(logits, ref_logits, atol=1e-5, rtol=1e-5)
    assert jnp.allclose(loss, ref_loss, atol=1e-5, rtol=1e-5)

    # targets=None path returns (B, T, V) logits and no loss.
    logits_only, no_loss = bigram_forward(idx, table_f32)
    jax.block_until_ready(logits_only)
    assert no_loss is None
    assert logits_only.shape == (B, T, vocab_size)
    assert jnp.allclose(logits_only.reshape(B * T, vocab_size), ref_logits,
                        atol=1e-5, rtol=1e-5)

    # bf16 table: one-hot gather runs on the native bf16 MXU path and remains
    # exact w.r.t. the bf16 weights (f32 accumulation).
    table_bf16 = table_f32.astype(jnp.bfloat16)
    logits_bf, loss_bf = bigram_forward(idx, table_bf16, targets)
    jax.block_until_ready((logits_bf, loss_bf))
    ref_logits_bf, ref_loss_bf = _reference_forward(idx, table_bf16, targets)
    assert jnp.allclose(logits_bf, ref_logits_bf, atol=1e-5, rtol=1e-5)
    assert jnp.allclose(loss_bf, ref_loss_bf, atol=1e-5, rtol=1e-5)

    # Multi-tile shape (N=4096 -> two 2048-row grid steps) to exercise the
    # pipelined, "parallel" grid and the per-row-loss reduction path.
    B2, T2 = 4, 1024
    idx2 = jax.random.randint(k_idx2, (B2, T2), 0, vocab_size, dtype=jnp.int32)
    tgt2 = jax.random.randint(k_tgt2, (B2, T2), 0, vocab_size, dtype=jnp.int32)
    logits2, loss2 = bigram_forward(idx2, table_f32, tgt2)
    jax.block_until_ready((logits2, loss2))
    ref_logits2, ref_loss2 = _reference_forward(idx2, table_f32, tgt2)
    assert jnp.allclose(logits2, ref_logits2, atol=1e-5, rtol=1e-5)
    assert jnp.allclose(loss2, ref_loss2, atol=1e-5, rtol=1e-5)

    # Fast path 1: padded logits (no post-kernel slice copy).
    logits2_pad, loss2_pad = bigram_forward(idx2, table_f32, tgt2,
                                            pad_logits=True)
    jax.block_until_ready((logits2_pad, loss2_pad))
    n2 = B2 * T2
    assert logits2_pad.shape[1] % _LANE == 0
    assert jnp.allclose(logits2_pad[:n2, :vocab_size], ref_logits2,
                        atol=1e-5, rtol=1e-5)
    assert jnp.allclose(loss2_pad, ref_loss2, atol=1e-5, rtol=1e-5)

    # Fast path 2: loss-only (logits HBM writeback skipped entirely).
    none_logits, loss2_only = bigram_forward(idx2, table_f32, tgt2,
                                             return_logits=False)
    jax.block_until_ready(loss2_only)
    assert none_logits is None
    assert jnp.allclose(loss2_only, ref_loss2, atol=1e-5, rtol=1e-5)

    # TODO(synk): generate()'s torch.multinomial sampling loop is host-side
    # autoregressive control flow, not part of the forward kernel.
    print("KERNEL_OK")
</pallas_src>

<mosaic_0001>
module attributes {stable_mosaic.version = 11 : i64} {
  func.func @_bigram_loss_kernel(%arg0: i32, %arg1: memref<128x1xi32, #tpu.memory_space<vmem>>, %arg2: memref<128x1xi32, #tpu.memory_space<vmem>>, %arg3: memref<128x128xf32, #tpu.memory_space<vmem>>, %arg4: memref<128x128xf32, #tpu.memory_space<vmem>>, %arg5: memref<128x1xf32, #tpu.memory_space<vmem>>) attributes {dimension_semantics = [#tpu.dimension_semantics<parallel>], iteration_bounds = array<i64: 1>, scalar_prefetch = 0 : i64, scratch_operands = 0 : i64, tpu.core_type = #tpu.core_type<tc>, window_params = [{transform_indices = @transform_0, window_bounds = array<i64: 128, 1>}, {transform_indices = @transform_1, window_bounds = array<i64: 128, 1>}, {pipeline_mode = #tpu.pipeline_mode<synchronous>, transform_indices = @transform_2, window_bounds = array<i64: 128, 128>}, {transform_indices = @transform_3, window_bounds = array<i64: 128, 128>}, {transform_indices = @transform_4, window_bounds = array<i64: 128, 1>}]} {
    %c0 = arith.constant 0 : index
    %c0_0 = arith.constant 0 : index
    %0 = vector.load %arg1[%c0, %c0_0] : memref<128x1xi32, #tpu.memory_space<vmem>>, vector<128x1xi32>
    %c0_1 = arith.constant 0 : index
    %c0_2 = arith.constant 0 : index
    %1 = vector.load %arg2[%c0_1, %c0_2] : memref<128x1xi32, #tpu.memory_space<vmem>>, vector<128x1xi32>
    %c0_3 = arith.constant 0 : index
    %c0_4 = arith.constant 0 : index
    %2 = vector.load %arg3[%c0_3, %c0_4] : memref<128x128xf32, #tpu.memory_space<vmem>>, vector<128x128xf32>
    %3 = tpu.iota {dimensions = array<i32: 1>} : vector<128x128xi32>
    %4 = vector.broadcast %0 : vector<128x1xi32> to vector<128x128xi32>
    %5 = arith.cmpi eq, %3, %4 : vector<128x128xi32>
    %6 = arith.extui %5 : vector<128x128xi1> to vector<128x128xi32>
    %7 = arith.sitofp %6 : vector<128x128xi32> to vector<128x128xf32>
    %cst = arith.constant dense<0.000000e+00> : vector<128x128xf32>
    %8 = tpu.matmul %7, %2, %cst {dimension_numbers = #tpu.dot_dimension_numbers<[1], [0], [0], [1], [0, 0, 1, 1], [], []>} : vector<128x128xf32>, vector<128x128xf32>, vector<128x128xf32> -> vector<128x128xf32>
    %c0_5 = arith.constant 0 : index
    %c0_6 = arith.constant 0 : index
    %9 = vector.load %arg4[%c0_5, %c0_6] : memref<128x128xf32, #tpu.memory_space<vmem>>, vector<128x128xf32>
    tpu.vector_store %arg4[%c0_5, %c0_6], %8 {strides = array<i32>} : memref<128x128xf32, #tpu.memory_space<vmem>>, vector<128x128xf32>,
    %cst_7 = arith.constant dense<0xFF800000> : vector<128xf32>
    %10 = vector.multi_reduction <maximumf>, %8, %cst_7 [1] : vector<128x128xf32> to vector<128xf32>
    %11 = vector.shape_cast %10 : vector<128xf32> to vector<128x1xf32>
    %12 = vector.broadcast %11 : vector<128x1xf32> to vector<128x128xf32>
    %13 = arith.subf %8, %12 : vector<128x128xf32>
    %14 = math.exp %13 : vector<128x128xf32>
    %cst_8 = arith.constant dense<0.000000e+00> : vector<128xf32>
    %15 = vector.multi_reduction <add>, %14, %cst_8 [1] : vector<128x128xf32> to vector<128xf32>
    %16 = vector.shape_cast %15 : vector<128xf32> to vector<128x1xf32>
    %17 = math.log %16 : vector<128x1xf32>
    %18 = arith.addf %11, %17 : vector<128x1xf32>
    %19 = vector.broadcast %1 : vector<128x1xi32> to vector<128x128xi32>
    %20 = arith.cmpi eq, %3, %19 : vector<128x128xi32>
    %cst_9 = arith.constant 0.000000e+00 : f32
    %21 = vector.broadcast %cst_9 : f32 to vector<128x128xf32>
    %22 = arith.select %20, %8, %21 : vector<128x128xi1>, vector<128x128xf32>
    %cst_10 = arith.constant dense<0.000000e+00> : vector<128xf32>
    %23 = vector.multi_reduction <add>, %22, %cst_10 [1] : vector<128x128xf32> to vector<128xf32>
    %24 = vector.shape_cast %23 : vector<128xf32> to vector<128x1xf32>
    %25 = arith.subf %18, %24 : vector<128x1xf32>
    %c128_i32 = arith.constant 128 : i32
    %26 = arith.muli %arg0, %c128_i32 : i32
    %27 = tpu.iota {dimensions = array<i32: 0>} : vector<128x1xi32>
    %28 = vector.broadcast %26 : i32 to vector<128x1xi32>
    %29 = arith.addi %28, %27 : vector<128x1xi32>
    %c16_i32 = arith.constant 16 : i32
    %30 = vector.broadcast %c16_i32 : i32 to vector<128x1xi32>
    %31 = arith.cmpi slt, %29, %30 : vector<128x1xi32>
    %cst_11 = arith.constant 0.000000e+00 : f32
    %32 = vector.broadcast %cst_11 : f32 to vector<128x1xf32>
    %33 = arith.select %31, %25, %32 : vector<128x1xi1>, vector<128x1xf32>
    %c0_12 = arith.constant 0 : index
    %c0_13 = arith.constant 0 : index
    %34 = vector.load %arg5[%c0_12, %c0_13] : memref<128x1xf32, #tpu.memory_space<vmem>>, vector<128x1xf32>
    tpu.vector_store %arg5[%c0_12, %c0_13], %33 {strides = array<i32>} : memref<128x1xf32, #tpu.memory_space<vmem>>, vector<128x1xf32>,
    return
  }
  func.func @transform_0(%arg0: i32) -> (i32, i32) {
    %c0_i32 = arith.constant 0 : i32
    %c0_i32_0 = arith.constant 0 : i32
    return %arg0, %c0_i32 : i32, i32
  }
  func.func @transform_1(%arg0: i32) -> (i32, i32) {
    %c0_i32 = arith.constant 0 : i32
    %c0_i32_0 = arith.constant 0 : i32
    return %arg0, %c0_i32 : i32, i32
  }
  func.func @transform_2(%arg0: i32) -> (i32, i32) {
    %c0_i32 = arith.constant 0 : i32
    %c0_i32_0 = arith.constant 0 : i32
    %c0_i32_1 = arith.constant 0 : i32
    return %c0_i32, %c0_i32_0 : i32, i32
  }
  func.func @transform_3(%arg0: i32) -> (i32, i32) {
    %c0_i32 = arith.constant 0 : i32
    %c0_i32_0 = arith.constant 0 : i32
    return %arg0, %c0_i32 : i32, i32
  }
  func.func @transform_4(%arg0: i32) -> (i32, i32) {
    %c0_i32 = arith.constant 0 : i32
    %c0_i32_0 = arith.constant 0 : i32
    return %arg0, %c0_i32 : i32, i32
  }
}

</mosaic_0001>

<bundles_post_ra>
// kernel: _forward_with_loss.1
= control target key start
LH: loop header
LB: loop body
LE: loop exit
PB: predicated region body
PF: predicated region fallthrough
CT: control target
= control target key end

     0   :  { %v884_v0 = vmov 0   ;;  %v64_v41 = vlaneseq  ;;  %v885_v44 = vmov 1.0   ;;  %s1146_s0 = inlined_call_operand.vmem [shape: s32[128,1], index: 0, kind: input, shape index: {}]   ;;  %s1147_s2 = inlined_call_operand.vmem [shape: f32[128,128], index: 2, kind: input, shape index: {}]   ;;  %s1148_s3 = inlined_call_operand.vmem [shape: f32[128,128], index: 3, kind: output, shape index: {0}]   ;;  %s1149_s1 = inlined_call_operand.vmem [shape: s32[128,1], index: 1, kind: input, shape index: {}]   ;;  %s1150_s4 = inlined_call_operand.vmem [shape: f32[128,1], index: 4, kind: output, shape index: {1}]  }
   0x1   :  { %874 = vset.pattern.permute.xlu0 %v884_v0  ;;  %v16_v1 = vld [vmem:[%s1146_s0] sm:$0xff]  ;;  %875 = vset.pattern.permute.xlu1 %v884_v0  ;;  %v17_v2 = vld [vmem:[%s1146_s0 + $0x8] sm:$0xff]  ;;  %v50_v5 = vld [vmem:[%s1147_s2 + $0x10] sm:$0xff] }
   0x2   :  { %67 = vperm.xlu0 %874, %v16_v1   ;;  %v48_v3 = vld [vmem:[%s1147_s2] sm:$0xff]  ;;  %v49_v4 = vld [vmem:[%s1147_s2 + $0x8] sm:$0xff]  ;;  %v51_v6 = vld [vmem:[%s1147_s2 + $0x18] sm:$0xff]  ;;  %v1008_v42 = vand.u32 127, %v64_v41 }
   0x3   :  { %v823_v7 = vpack.c.bf16 %v49_v4, %v48_v3  ;;  %v827_v8 = vpack.c.bf16 %v51_v6, %v50_v5  ;;  %v52_v9 = vld [vmem:[%s1147_s2 + $0x20] sm:$0xff]  ;;  %v53_v10 = vld [vmem:[%s1147_s2 + $0x28] sm:$0xff]  ;;  %v18_v11 = vld [vmem:[%s1146_s0 + $0x10] sm:$0xff] }
   0x4   :  { %v831_v12 = vpack.c.bf16 %v53_v10, %v52_v9  ;;  %v54_v13 = vld [vmem:[%s1147_s2 + $0x30] sm:$0xff]  ;;  %v55_v14 = vld [vmem:[%s1147_s2 + $0x38] sm:$0xff]  ;;  %v56_v17 = vld [vmem:[%s1147_s2 + $0x40] sm:$0xff] }
   0x5   :  { %824 = vmatprep.subr.bf16.mxu0 %v823_v7  ;;  %855 = vmatprep.subr.bf16.mxu1 %v823_v7  ;;  %v19_v15 = vld [vmem:[%s1146_s0 + $0x18] sm:$0xff]  ;;  %v835_v16 = vpack.c.bf16 %v55_v14, %v54_v13  ;;  %v57_v18 = vld [vmem:[%s1147_s2 + $0x48] sm:$0xff]  ;;  %v20_v19 = vld [vmem:[%s1146_s0 + $0x20] sm:$0xff] }
   0x6   :  { %70 = vperm.xlu0 %874, %v17_v2   ;;  %826 = vmatpush3.bf16.msra.mxu0 %v823_v7  ;;  %v839_v20 = vpack.c.bf16 %v57_v18, %v56_v17  ;;  %v58_v21 = vld [vmem:[%s1147_s2 + $0x50] sm:$0xff]  ;;  %v59_v22 = vld [vmem:[%s1147_s2 + $0x58] sm:$0xff]  ;;  %v21_v23 = vld [vmem:[%s1146_s0 + $0x28] sm:$0xff] }
   0x7   :  { %863 = vmatpush3.bf16.msra.mxu1 %v823_v7  ;;  %828 = vmatprep.subr.bf16.mxu0 %v827_v8  ;;  %v843_v24 = vpack.c.bf16 %v59_v22, %v58_v21  ;;  %v60_v25 = vld [vmem:[%s1147_s2 + $0x60] sm:$0xff]  ;;  %v61_v26 = vld [vmem:[%s1147_s2 + $0x68] sm:$0xff]  ;;  %v22_v27 = vld [vmem:[%s1146_s0 + $0x30] sm:$0xff] }
   0x8   :  { %856 = vmatprep.subr.bf16.mxu1 %v827_v8  ;;  %v847_v28 = vpack.c.bf16 %v61_v26, %v60_v25  ;;  %v62_v29 = vld [vmem:[%s1147_s2 + $0x70] sm:$0xff]  ;;  %v63_v30 = vld [vmem:[%s1147_s2 + $0x78] sm:$0xff]  ;;  %v24_v33 = vld [vmem:[%s1146_s0 + $0x40] sm:$0xff]  ;;  %v886_v26 = vmov 0.0  }
   0x9   :  { %v23_v31 = vld [vmem:[%s1146_s0 + $0x38] sm:$0xff]  ;;  %v851_v32 = vpack.c.bf16 %v63_v30, %v62_v29  ;;  %91 = vperm.xlu1 %875, %v24_v33   ;;  %v25_v34 = vld [vmem:[%s1146_s0 + $0x48] sm:$0xff]  ;;  %v26_v35 = vld [vmem:[%s1146_s0 + $0x50] sm:$0xff] }
   0xa   :  { %73 = vperm.xlu0 %874, %v18_v11   ;;  %830 = vmatpush3.bf16.msra.mxu0 %v827_v8  ;;  %v27_v36 = vld [vmem:[%s1146_s0 + $0x58] sm:$0xff]  ;;  %v28_v37 = vld [vmem:[%s1146_s0 + $0x60] sm:$0xff]  ;;  %v29_v38 = vld [vmem:[%s1146_s0 + $0x68] sm:$0xff] }
   0xb   :  { %864 = vmatpush3.bf16.msra.mxu1 %v827_v8  ;;  %832 = vmatprep.subr.bf16.mxu0 %v831_v12  ;;  %v30_v39 = vld [vmem:[%s1146_s0 + $0x70] sm:$0xff]  ;;  %v31_v40 = vld [vmem:[%s1146_s0 + $0x78] sm:$0xff]  ;;  %v33_v0 = vld [vmem:[%s1149_s1 + $0x8] sm:$0xff] }
   0xc   :  { %857 = vmatprep.subr.bf16.mxu1 %v831_v12  ;;  %v32_v3 = vld [vmem:[%s1149_s1] sm:$0xff] }
   0xd   :  { %94 = vperm.xlu1 %875, %v25_v34  }
   0xe   :  { %76 = vperm.xlu0 %874, %v19_v15   ;;  %834 = vmatpush3.bf16.msra.mxu0 %v831_v12 }
   0xf   :  { %865 = vmatpush3.bf16.msra.mxu1 %v831_v12  ;;  %836 = vmatprep.subr.bf16.mxu0 %v835_v16 }
  0x10   :  { %858 = vmatprep.subr.bf16.mxu1 %v835_v16 }
  0x11   :  { %97 = vperm.xlu1 %875, %v26_v35  }
  0x12   :  { %79 = vperm.xlu0 %874, %v20_v19   ;;  %838 = vmatpush3.bf16.msra.mxu0 %v835_v16 }
  0x13   :  { %866 = vmatpush3.bf16.msra.mxu1 %v835_v16  ;;  %840 = vmatprep.subr.bf16.mxu0 %v839_v20 }
  0x14   :  { %859 = vmatprep.subr.bf16.mxu1 %v839_v20 }
  0x15   :  { %100 = vperm.xlu1 %875, %v27_v36  }
  0x16   :  { %82 = vperm.xlu0 %874, %v21_v23   ;;  %842 = vmatpush3.bf16.msra.mxu0 %v839_v20 }
  0x17   :  { %867 = vmatpush3.bf16.msra.mxu1 %v839_v20  ;;  %844 = vmatprep.subr.bf16.mxu0 %v843_v24 }
  0x18   :  { %860 = vmatprep.subr.bf16.mxu1 %v843_v24 }
  0x19   :  { %103 = vperm.xlu1 %875, %v28_v37  }
  0x1a   :  { %85 = vperm.xlu0 %874, %v22_v27   ;;  %846 = vmatpush3.bf16.msra.mxu0 %v843_v24 }
  0x1b   :  { %868 = vmatpush3.bf16.msra.mxu1 %v843_v24  ;;  %848 = vmatprep.subr.bf16.mxu0 %v847_v28 }
  0x1c   :  { %861 = vmatprep.subr.bf16.mxu1 %v847_v28 }
  0x1d   :  { %106 = vperm.xlu1 %875, %v29_v38  }
  0x1e   :  { %88 = vperm.xlu0 %874, %v23_v31   ;;  %850 = vmatpush3.bf16.msra.mxu0 %v847_v28 }
  0x1f   :  { %852 = vmatprep.subr.bf16.mxu0 %v851_v32  ;;  %869 = vmatpush3.bf16.msra.mxu1 %v847_v28 }
  0x20   :  { %862 = vmatprep.subr.bf16.mxu1 %v851_v32 }
  0x21   :  { %109 = vperm.xlu1 %875, %v30_v39  }
  0x22   :  { %854 = vmatpush3.bf16.msra.mxu0 %v851_v32 }
  0x23   :  { %870 = vmatpush3.bf16.msra.mxu1 %v851_v32 }
  0x25   :  { %112 = vperm.xlu1 %875, %v31_v40  }
  0x81   :  { %v68_v43 = vpop.permute.xlu0 %67 }
  0x82   :  { %vm114_vm0 = vcmp.eq.s32.totalorder %v1008_v42, %v68_v43 }
  0x83   :  { %799 = vmatprep.mubr.msk.f32.mxu0 %vm114_vm0, %v885_v44 }
  0x85   :  { %v71_v45 = vpop.permute.xlu0 %70 }
  0x86   :  { %vm115_vm1 = vcmp.eq.s32.totalorder %v1008_v42, %v71_v45 }
  0x87   :  { %800 = vmatmul.mubr.msk.f32.vlgmr.msra.gmra.mrb[0].mxu0 %vm115_vm1, %v885_v44 }
  0x88   :  { %v92_v52 = vpop.permute.xlu1 %91 }
  0x89   :  { %v74_v46 = vpop.permute.xlu0 %73  ;;  %vm122_vm8 = vcmp.eq.s32.totalorder %v1008_v42, %v92_v52 }
  0x8a   :  { %vm116_vm2 = vcmp.eq.s32.totalorder %v1008_v42, %v74_v46  ;;  %811 = vmatprep.mubr.msk.f32.mxu1 %vm122_vm8, %v885_v44 }
  0x8b   :  { %802 = vmatprep.mubr.msk.f32.mxu0 %vm116_vm2, %v885_v44  ;;  %vm678_vm2 = vcmask 7168  }
  0x8c   :  { %v95_v53 = vpop.permute.xlu1 %94  ;;  %681 = vst.msk [vmem:[%s1150_s4 + $0x10] sm:$0xff] %vm678_vm2, %v886_v26  ;;  %682 = vst.msk [vmem:[%s1150_s4 + $0x18] sm:$0xff] %vm678_vm2, %v886_v26 }
  0x8d   :  { %v77_v47 = vpop.permute.xlu0 %76  ;;  %vm123_vm9 = vcmp.eq.s32.totalorder %v1008_v42, %v95_v53  ;;  %683 = vst.msk [vmem:[%s1150_s4 + $0x20] sm:$0xff] %vm678_vm2, %v886_v26  ;;  %684 = vst.msk [vmem:[%s1150_s4 + $0x28] sm:$0xff] %vm678_vm2, %v886_v26 }
  0x8e   :  { %vm117_vm3 = vcmp.eq.s32.totalorder %v1008_v42, %v77_v47  ;;  %812 = vmatmul.mubr.msk.f32.vlgmr.msra.gmra.mrb[0].mxu1 %vm123_vm9, %v885_v44  ;;  %685 = vst.msk [vmem:[%s1150_s4 + $0x30] sm:$0xff] %vm678_vm2, %v886_v26  ;;  %686 = vst.msk [vmem:[%s1150_s4 + $0x38] sm:$0xff] %vm678_vm2, %v886_v26 }
  0x8f   :  { %803 = vmatmul.mubr.msk.f32.gmra.mrb[2].mxu0 %vm117_vm3, %v885_v44  ;;  %687 = vst.msk [vmem:[%s1150_s4 + $0x40] sm:$0xff] %vm678_vm2, %v886_v26  ;;  %688 = vst.msk [vmem:[%s1150_s4 + $0x48] sm:$0xff] %vm678_vm2, %v886_v26 }
  0x90   :  { %v98_v54 = vpop.permute.xlu1 %97  ;;  %689 = vst.msk [vmem:[%s1150_s4 + $0x50] sm:$0xff] %vm678_vm2, %v886_v26  ;;  %690 = vst.msk [vmem:[%s1150_s4 + $0x58] sm:$0xff] %vm678_vm2, %v886_v26 }
  0x91   :  { %v80_v48 = vpop.permute.xlu0 %79  ;;  %vm124_vm10 = vcmp.eq.s32.totalorder %v1008_v42, %v98_v54  ;;  %691 = vst.msk [vmem:[%s1150_s4 + $0x60] sm:$0xff] %vm678_vm2, %v886_v26  ;;  %692 = vst.msk [vmem:[%s1150_s4 + $0x68] sm:$0xff] %vm678_vm2, %v886_v26 }
  0x92   :  { %vm118_vm4 = vcmp.eq.s32.totalorder %v1008_v42, %v80_v48  ;;  %814 = vmatprep.mubr.msk.f32.mxu1 %vm124_vm10, %v885_v44  ;;  %693 = vst.msk [vmem:[%s1150_s4 + $0x70] sm:$0xff] %vm678_vm2, %v886_v26  ;;  %694 = vst.msk [vmem:[%s1150_s4 + $0x78] sm:$0xff] %vm678_vm2, %v886_v26 }
  0x93   :  { %805 = vmatprep.mubr.msk.f32.mxu0 %vm118_vm4, %v885_v44 }
  0x94   :  { %v101_v55 = vpop.permute.xlu1 %100 }
  0x95   :  { %v83_v49 = vpop.permute.xlu0 %82  ;;  %vm125_vm11 = vcmp.eq.s32.totalorder %v1008_v42, %v101_v55 }
  0x96   :  { %vm119_vm5 = vcmp.eq.s32.totalorder %v1008_v42, %v83_v49  ;;  %815 = vmatmul.mubr.msk.f32.gmra.mrb[2].mxu1 %vm125_vm11, %v885_v44 }
  0x97   :  { %806 = vmatmul.mubr.msk.f32.gmra.mrb[4].mxu0 %vm119_vm5, %v885_v44 }
  0x98   :  { %v104_v56 = vpop.permute.xlu1 %103 }
  0x99   :  { %v86_v50 = vpop.permute.xlu0 %85  ;;  %vm126_vm12 = vcmp.eq.s32.totalorder %v1008_v42, %v104_v56 }
  0x9a   :  { %vm120_vm6 = vcmp.eq.s32.totalorder %v1008_v42, %v86_v50  ;;  %817 = vmatprep.mubr.msk.f32.mxu1 %vm126_vm12, %v885_v44 }
  0x9b   :  { %808 = vmatprep.mubr.msk.f32.mxu0 %vm120_vm6, %v885_v44 }
  0x9c   :  { %v107_v57 = vpop.permute.xlu1 %106 }
  0x9d   :  { %v89_v51 = vpop.permute.xlu0 %88  ;;  %vm127_vm13 = vcmp.eq.s32.totalorder %v1008_v42, %v107_v57 }
  0x9e   :  { %vm121_vm7 = vcmp.eq.s32.totalorder %v1008_v42, %v89_v51  ;;  %818 = vmatmul.mubr.msk.f32.gmra.mrb[4].mxu1 %vm127_vm13, %v885_v44 }
  0x9f   :  { %809 = vmatmul.mubr.msk.f32.gmra.mrb[6].mxu0 %vm121_vm7, %v885_v44 }
  0xa0   :  { %v110_v58 = vpop.permute.xlu1 %109 }
  0xa1   :  { %vm128_vm14 = vcmp.eq.s32.totalorder %v1008_v42, %v110_v58 }
  0xa2   :  { %820 = vmatprep.mubr.msk.f32.mxu1 %vm128_vm14, %v885_v44 }
  0xa4   :  { %v113_v59 = vpop.permute.xlu1 %112 }
  0xa5   :  { %vm129_vm15 = vcmp.eq.s32.totalorder %v1008_v42, %v113_v59 }
  0xa6   :  { %821 = vmatmul.mubr.msk.f32.gmra.mrb[6].mxu1 %vm129_vm15, %v885_v44 }
 0x15a   :  { %v801_v60 = vpop.f32.mrb[0].mxu0 }
 0x15b   :  { %308 = vst [vmem:[%s1148_s3 + $0x8] sm:$0xff] %v801_v60  ;;  %325 = vmax.xlane.f32.xlu1 %v801_v60  ;;  %v228_v61 = vpop.f32.mrb[1].mxu0 }
 0x15c   :  { %307 = vst [vmem:[%s1148_s3] sm:$0xff] %v228_v61  ;;  %323 = vmax.xlane.f32.xlu0 %v228_v61 }
 0x161   :  { %v813_v6 = vpop.f32.mrb[0].mxu1 }
 0x162   :  { %v804_v62 = vpop.f32.mrb[2].mxu0  ;;  %316 = vst [vmem:[%s1148_s3 + $0x48] sm:$0xff] %v813_v6  ;;  %v268_v7 = vpop.f32.mrb[1].mxu1 }
 0x163   :  { %310 = vst [vmem:[%s1148_s3 + $0x18] sm:$0xff] %v804_v62  ;;  %v238_v63 = vpop.f32.mrb[3].mxu0  ;;  %315 = vst [vmem:[%s1148_s3 + $0x40] sm:$0xff] %v268_v7 }
 0x164   :  { %309 = vst [vmem:[%s1148_s3 + $0x10] sm:$0xff] %v238_v63 }
 0x169   :  { %v816_v8 = vpop.f32.mrb[2].mxu1 }
 0x16a   :  { %v807_v1 = vpop.f32.mrb[4].mxu0  ;;  %318 = vst [vmem:[%s1148_s3 + $0x58] sm:$0xff] %v816_v8  ;;  %v278_v9 = vpop.f32.mrb[3].mxu1 }
 0x16b   :  { %312 = vst [vmem:[%s1148_s3 + $0x28] sm:$0xff] %v807_v1  ;;  %v248_v2 = vpop.f32.mrb[5].mxu0  ;;  %317 = vst [vmem:[%s1148_s3 + $0x50] sm:$0xff] %v278_v9 }
 0x16c   :  { %311 = vst [vmem:[%s1148_s3 + $0x20] sm:$0xff] %v248_v2  ;;  %487 = vperm.xlu1 %875, %v33_v0  }
 0x171   :  { %v819_v10 = vpop.f32.mrb[4].mxu1 }
 0x172   :  { %484 = vperm.xlu0 %874, %v32_v3   ;;  %v810_v4 = vpop.f32.mrb[6].mxu0  ;;  %320 = vst [vmem:[%s1148_s3 + $0x68] sm:$0xff] %v819_v10  ;;  %v288_v11 = vpop.f32.mrb[5].mxu1 }
 0x173   :  { %314 = vst [vmem:[%s1148_s3 + $0x38] sm:$0xff] %v810_v4  ;;  %v258_v5 = vpop.f32.mrb[7].mxu0  ;;  %319 = vst [vmem:[%s1148_s3 + $0x60] sm:$0xff] %v288_v11 }
 0x174   :  { %313 = vst [vmem:[%s1148_s3 + $0x30] sm:$0xff] %v258_v5 }
 0x179   :  { %v822_v12 = vpop.f32.mrb[6].mxu1 }
 0x17a   :  { %322 = vst [vmem:[%s1148_s3 + $0x78] sm:$0xff] %v822_v12  ;;  %v298_v13 = vpop.f32.mrb[7].mxu1 }
 0x17b   :  { %321 = vst [vmem:[%s1148_s3 + $0x70] sm:$0xff] %v298_v13 }
 0x1e8   :  { %v326_v14 = vpop.xlane.xlu1 %325 }
 0x1e9   :  { %v356_v15 = vsub.f32 %v801_v60, %v326_v14  ;;  %v324_v16 = vpop.xlane.xlu0 %323 }
 0x1ea   :  { %v355_v17 = vsub.f32 %v228_v61, %v324_v16 }
 0x1eb   :  { %v373_v18 = vmul.f32 1.442695, %v356_v15 }
 0x1ec   :  { %v371_v19 = vmul.f32 1.442695, %v355_v17  ;;  %v488_v23 = vpop.permute.xlu1 %487 }
 0x1ed   :  { %876 = vpow2.f32 %v373_v18  ;;  %vm532_vm1 = vcmp.eq.s32.totalorder %v1008_v42, %v488_v23 }
 0x1ee   :  { %878 = vpow2.f32 %v371_v19  ;;  %v548_v25 = vsel %vm532_vm1, %v801_v60, 0.0 }
 0x1f1   :  { %v485_v20 = vpop.permute.xlu0 %484 }
 0x1f2   :  { %vm531_vm0 = vcmp.eq.s32.totalorder %v1008_v42, %v485_v20 }
 0x1f3   :  { %v547_v24 = vsel %vm531_vm0, %v228_v61, 0.0 }
 0x1f7   :  { %v877_v21 = vpop.eup %876 }
 0x1f8   :  { %v879_v22 = vpop.eup %878  ;;  %405 = vadd.xlane.f32.xlu1 %v877_v21 }
 0x1f9   :  { %403 = vadd.xlane.f32.xlu0 %v879_v22 }
 0x1fd   :  { %563 = vadd.xlane.f32.xlu0 %v547_v24 }
 0x201   :  { %565 = vadd.xlane.f32.xlu0 %v548_v25 }
 0x285   :  { %v406_v27 = vpop.xlane.xlu1 %405 }
 0x286   :  { %880 = vlog2.f32 %v406_v27  ;;  %v404_v28 = vpop.xlane.xlu0 %403 }
 0x287   :  { %882 = vlog2.f32 %v404_v28 }
 0x28a   :  { %v564_v29 = vpop.xlane.xlu0 %563 }
 0x28e   :  { %v566_v36 = vpop.xlane.xlu0 %565 }
 0x290   :  { %v881_v30 = vpop.eup %880 }
 0x291   :  { %v883_v31 = vpop.eup %882  ;;  %v438_v32 = vmul.f32 0.6931472, %v881_v30 }
 0x292   :  { %v436_v33 = vmul.f32 0.6931472, %v883_v31 }
 0x293   :  { %v468_v34 = vadd.f32 %v438_v32, %v326_v14 }
 0x294   :  { %v467_v35 = vadd.f32 %v436_v33, %v324_v16 }
 0x295   :  { %v596_v37 = vsub.f32 %v468_v34, %v566_v36 }
 0x296   :  { %v595_v38 = vsub.f32 %v467_v35, %v564_v29 }
 0x297   :  { %680 = vst.msk [vmem:[%s1150_s4 + $0x8] sm:$0xff] %vm678_vm2, %v596_v37 }
 0x298   :  { %679 = vst.msk [vmem:[%s1150_s4] sm:$0xff] %vm678_vm2, %v595_v38 }

</bundles_post_ra>
